<compile_context>
chip_gen: v6e
topology: v6e:2x2x1
jax: 0.10.0
libtpu: 0.0.40
codegen_flags: <defaults>
</compile_context>

<pallas_src>
import functools

import jax
import jax.numpy as jnp
from jax.experimental import pallas as pl
from jax.experimental.pallas import tpu as pltpu

_LANES = 128
_SUBLANES = 8


def _masked_sq_sum_kernel(yhat_ref, y_ref, mask_ref, s_out, m_out,
                          s_acc, m_acc, *, n_rows: int, tile_n: int):
    """Grid = (F tiles [parallel], N tiles [arbitrary / reduction])."""
    ni = pl.program_id(1)
    last = pl.num_programs(1) - 1

    @pl.when(ni == 0)
    def _init():
        s_acc[...] = jnp.zeros_like(s_acc)
        m_acc[...] = jnp.zeros_like(m_acc)

    m = mask_ref[...].astype(jnp.float32)
    diff = yhat_ref[...].astype(jnp.float32) - y_ref[...].astype(jnp.float32)
    contrib = m * (diff * diff)

    def _accumulate(mv, cv):
        # Sublane-preserving fold (pure VPU adds) into the resident (8, tile_f)
        # partials; the cross-sublane (XLU) reduce is deferred to finalize.
        tn, tf = cv.shape
        s_acc[...] += jnp.sum(cv.reshape(tn // _SUBLANES, _SUBLANES, tf), axis=0)
        m_acc[...] += jnp.sum(mv.reshape(tn // _SUBLANES, _SUBLANES, tf), axis=0)

    if n_rows % tile_n != 0:
        # Only the last N tile reads past the end of the array: keep the fast
        # unmasked accumulate on every other step (saves iota + 2 selects).
        @pl.when(ni != last)
        def _fast():
            _accumulate(m, contrib)

        @pl.when(ni == last)
        def _ragged():
            row = ni * tile_n + jax.lax.broadcasted_iota(jnp.int32, m.shape, 0)
            valid = row < n_rows
            # jnp.where also discards NaN/garbage from the padded block read.
            _accumulate(jnp.where(valid, m, 0.0),
                        jnp.where(valid, contrib, 0.0))
    else:
        _accumulate(m, contrib)

    @pl.when(ni == last)
    def _finalize():
        s_out[...] = jnp.sum(s_acc[...], axis=0, keepdims=True)   # (1, tile_f)
        m_out[...] = jnp.sum(m_acc[...], axis=0, keepdims=True)   # (1, tile_f)


def _round_up(x: int, m: int) -> int:
    return ((x + m - 1) // m) * m


def _row_packing(*dtypes) -> int:
    """Sublane packing (second-minor tile rows) of the narrowest input dtype."""
    pack = _SUBLANES
    for dt in dtypes:
        it = jnp.dtype(dt).itemsize
        pack = max(pack, {1: 32, 2: 16, 4: 8}.get(it, _SUBLANES))
    return pack


def _vmem_budgets() -> tuple[int, int]:
    """(input double-buffer budget, scoped vmem limit), sized per-chip."""
    try:
        phys = int(pltpu.get_tpu_info().vmem_capacity_bytes)
    except Exception:
        phys = 64 * 1024 * 1024          # conservative: v7x per-TC VMEM
    limit = max(32 * 1024 * 1024, min((3 * phys) // 4, 100 * 1024 * 1024))
    return limit - 8 * 1024 * 1024, limit


def _choose_fold(N: int, F: int) -> tuple[int, int]:
    """Fold factor g (sample rows folded into lanes) and zero-pad rows."""
    if F <= 0 or F >= _LANES or _LANES % F != 0:
        return 1, 0
    g_max = _LANES // F
    for g in range(g_max, 1, -1):
        if N % g == 0:
            return g, 0                  # zero-copy row-major reshape
    return g_max, (-N) % g_max           # no divisor: pad a few zero-mask rows


def _pick_tile_f(F_eff: int) -> int:
    """Lane-dense F tile; >=2 tiles when possible (feeds both TCs on v7x)."""
    if F_eff % _LANES != 0 or F_eff < 2 * _LANES:
        return F_eff                     # single full-extent block
    for k in range(2, F_eff // _LANES + 1):
        if F_eff % k == 0 and (F_eff // k) % _LANES == 0:
            return F_eff // k
    return F_eff


def masked_weighted_mse_loss(y_hat: jax.Array, y: jax.Array, mask: jax.Array,
                             w, *, tile_n: int | None = None,
                             buffer_count: int | None = None) -> jax.Array:
    """Pallas implementation of MaskedWeightedMSELoss(w).forward(y_hat, y, mask).

    y_hat, y, mask: shape (N, F); may be narrower dtypes (bf16, int8, bool) —
    upcast to f32 inside the kernel. w: per-feature weights of length F.
    Returns a scalar float32.
    """
    N, F = y_hat.shape
    assert y.shape == (N, F) and mask.shape == (N, F)
    wf = jnp.asarray(w, dtype=jnp.float32).reshape(-1)
    assert wf.shape == (F,), f"weight vector must have length F={F}"

    if mask.dtype == jnp.bool_:
        mask = mask.astype(jnp.int8)

    # ---- Small-F lane folding: (N, F) -> (N/g, g*F). --------------------
    g, pad = _choose_fold(N, F)
    if pad:
        y_hat = jnp.pad(y_hat, ((0, pad), (0, 0)))
        y = jnp.pad(y, ((0, pad), (0, 0)))
        mask = jnp.pad(mask, ((0, pad), (0, 0)))   # zero mask -> no contribution
    n_rows = (N + pad) // g
    F_eff = g * F
    if g > 1:
        y_hat = y_hat.reshape(n_rows, F_eff)
        y = y.reshape(n_rows, F_eff)
        mask = mask.reshape(n_rows, F_eff)

    # ---- Tiling. ---------------------------------------------------------
    tile_f = _pick_tile_f(F_eff)
    row_pack = _row_packing(y_hat.dtype, y.dtype, mask.dtype)
    bytes_per_row = tile_f * (jnp.dtype(y_hat.dtype).itemsize
                              + jnp.dtype(y.dtype).itemsize
                              + jnp.dtype(mask.dtype).itemsize)
    budget, vmem_limit = _vmem_budgets()
    if tile_n is None:
        tile_n = budget // (2 * bytes_per_row)     # 3 inputs, double-buffered
    tile_n = min(int(tile_n), _round_up(n_rows, row_pack))
    tile_n = max(row_pack, _round_up(tile_n, row_pack))

    grid = (F_eff // tile_f, pl.cdiv(n_rows, tile_n))

    spec_kwargs = {}
    if buffer_count is not None and buffer_count != 2:
        spec_kwargs["pipeline_mode"] = pl.Buffered(buffer_count)
    data_spec = pl.BlockSpec((tile_n, tile_f), lambda fi, ni: (ni, fi),
                             **spec_kwargs)
    col_spec = pl.BlockSpec((1, tile_f), lambda fi, ni: (0, fi))

    s_col, m_col = pl.pallas_call(
        functools.partial(_masked_sq_sum_kernel, n_rows=n_rows, tile_n=tile_n),
        out_shape=(jax.ShapeDtypeStruct((1, F_eff), jnp.float32),
                   jax.ShapeDtypeStruct((1, F_eff), jnp.float32)),
        grid_spec=pltpu.PrefetchScalarGridSpec(
            num_scalar_prefetch=0,
            grid=grid,
            in_specs=[data_spec, data_spec, data_spec],
            out_specs=[col_spec, col_spec],
            scratch_shapes=[
                pltpu.VMEM((_SUBLANES, tile_f), jnp.float32),   # S partials
                pltpu.VMEM((_SUBLANES, tile_f), jnp.float32),   # mask-count partials
            ],
        ),
        compiler_params=pltpu.CompilerParams(
            # F tiles are independent -> shard across TCs on v7x; N is the
            # reduction axis and must stay "arbitrary".
            dimension_semantics=("parallel", "arbitrary"),
            vmem_limit_bytes=int(vmem_limit),
        ),
    )(y_hat, y, mask)

    # ---- O(F) finalize: un-fold, clip(min=1), weight, mean over features.
    S = s_col.reshape(g, F).sum(axis=0)
    M = m_col.reshape(g, F).sum(axis=0)
    denom = jnp.maximum(M, 1.0)
    return jnp.mean(wf * S / denom)


def _reference(y_hat, y, mask, w):
    y_hat = y_hat.astype(jnp.float32)
    y = y.astype(jnp.float32)
    mask = mask.astype(jnp.float32)
    w = jnp.asarray(w, dtype=jnp.float32).reshape(-1)
    denom = jnp.maximum(jnp.sum(mask, axis=0), 1.0)      # .clip(min=1)
    w_eff = mask / denom
    return jnp.mean(jnp.sum(w * w_eff * jnp.square(y_hat - y), axis=0))


if __name__ == "__main__":
    key = jax.random.PRNGKey(0)
    keys = jax.random.split(key, 12)

    # Case 1: module's nominal small shape (batch=16, features=32), narrow
    # dtypes (bf16 predictions/targets, int8 mask). F=32 lane-folds (g=4) into
    # a lane-dense (4, 128) problem; column 0 is fully masked -> clip(min=1).
    N1, F1 = 16, 32
    y_hat1 = jax.random.normal(keys[0], (N1, F1), dtype=jnp.float32).astype(jnp.bfloat16)
    y1 = jax.random.normal(keys[1], (N1, F1), dtype=jnp.float32).astype(jnp.bfloat16)
    mask1 = (jax.random.uniform(keys[2], (N1, F1)) > 0.3).astype(jnp.int8)
    mask1 = mask1.at[:, 0].set(0)
    w1 = jnp.linspace(0.5, 1.5, F1, dtype=jnp.float32)
    out1 = jax.block_until_ready(masked_weighted_mse_loss(y_hat1, y1, mask1, w1))
    ref1 = _reference(y_hat1, y1, mask1, w1)
    assert jnp.allclose(out1, ref1, rtol=1e-4, atol=1e-6), (out1, ref1)

    # Case 2: lane-dense F (two F tiles) + ragged multi-step N reduction (f32).
    N2, F2 = 20, 256
    y_hat2 = jax.random.normal(keys[3], (N2, F2), dtype=jnp.float32)
    y2 = jax.random.normal(keys[4], (N2, F2), dtype=jnp.float32)
    mask2 = (jax.random.uniform(keys[5], (N2, F2)) > 0.5).astype(jnp.float32)
    w2 = jnp.linspace(0.1, 2.0, F2, dtype=jnp.float32)
    out2 = jax.block_until_ready(
        masked_weighted_mse_loss(y_hat2, y2, mask2, w2, tile_n=8))
    ref2 = _reference(y_hat2, y2, mask2, w2)
    assert jnp.allclose(out2, ref2, rtol=1e-5, atol=1e-6), (out2, ref2)

    # Case 3: F not dividing 128 (no fold, full-extent feature block) + ragged N.
    N3, F3 = 17, 48
    y_hat3 = jax.random.normal(keys[6], (N3, F3), dtype=jnp.float32)
    y3 = jax.random.normal(keys[7], (N3, F3), dtype=jnp.float32)
    mask3 = (jax.random.uniform(keys[8], (N3, F3)) > 0.4).astype(jnp.float32)
    w3 = jnp.linspace(0.2, 1.2, F3, dtype=jnp.float32)
    out3 = jax.block_until_ready(masked_weighted_mse_loss(y_hat3, y3, mask3, w3))
    ref3 = _reference(y_hat3, y3, mask3, w3)
    assert jnp.allclose(out3, ref3, rtol=1e-5, atol=1e-6), (out3, ref3)

    # Case 4: small F with prime N -> no zero-copy fold; pad-rows fold path.
    N4, F4 = 17, 32
    y_hat4 = jax.random.normal(keys[9], (N4, F4), dtype=jnp.float32)
    y4 = jax.random.normal(keys[10], (N4, F4), dtype=jnp.float32)
    mask4 = (jax.random.uniform(keys[11], (N4, F4)) > 0.5).astype(jnp.float32)
    w4 = jnp.linspace(1.0, 2.0, F4, dtype=jnp.float32)
    out4 = jax.block_until_ready(masked_weighted_mse_loss(y_hat4, y4, mask4, w4))
    ref4 = _reference(y_hat4, y4, mask4, w4)
    assert jnp.allclose(out4, ref4, rtol=1e-5, atol=1e-6), (out4, ref4)

    print("KERNEL_OK")
</pallas_src>

<mosaic_0001>
module attributes {stable_mosaic.version = 11 : i64} {
  func.func @_masked_sq_sum_kernel(%arg0: i32, %arg1: i32, %arg2: memref<32x128xbf16, #tpu.memory_space<vmem>>, %arg3: memref<32x128xbf16, #tpu.memory_space<vmem>>, %arg4: memref<32x128xi8, #tpu.memory_space<vmem>>, %arg5: memref<1x128xf32, #tpu.memory_space<vmem>>, %arg6: memref<1x128xf32, #tpu.memory_space<vmem>>, %arg7: memref<8x128xf32, #tpu.memory_space<vmem>>, %arg8: memref<8x128xf32, #tpu.memory_space<vmem>>) attributes {dimension_semantics = [#tpu.dimension_semantics<parallel>, #tpu.dimension_semantics<arbitrary>], iteration_bounds = array<i64: 1, 1>, scalar_prefetch = 0 : i64, scratch_operands = 2 : i64, tpu.core_type = #tpu.core_type<tc>, window_params = [{transform_indices = @transform_0, window_bounds = array<i64: 32, 128>}, {transform_indices = @transform_1, window_bounds = array<i64: 32, 128>}, {transform_indices = @transform_2, window_bounds = array<i64: 32, 128>}, {transform_indices = @transform_3, window_bounds = array<i64: 1, 128>}, {transform_indices = @transform_4, window_bounds = array<i64: 1, 128>}]} {
    %c0_i32 = arith.constant 0 : i32
    %0 = arith.cmpi eq, %arg1, %c0_i32 : i32
    %1 = arith.extui %0 : i1 to i32
    %c0_i32_0 = arith.constant 0 : i32
    %2 = arith.cmpi ne, %1, %c0_i32_0 : i32
    scf.if %2 {
      %cst = arith.constant 0.000000e+00 : f32
      %21 = vector.broadcast %cst : f32 to vector<8x128xf32>
      %c0_12 = arith.constant 0 : index
      %c0_13 = arith.constant 0 : index
      %22 = vector.load %arg7[%c0_12, %c0_13] : memref<8x128xf32, #tpu.memory_space<vmem>>, vector<8x128xf32>
      tpu.vector_store %arg7[%c0_12, %c0_13], %21 {strides = array<i32>} : memref<8x128xf32, #tpu.memory_space<vmem>>, vector<8x128xf32>,
      %cst_14 = arith.constant 0.000000e+00 : f32
      %23 = vector.broadcast %cst_14 : f32 to vector<8x128xf32>
      %c0_15 = arith.constant 0 : index
      %c0_16 = arith.constant 0 : index
      %24 = vector.load %arg8[%c0_15, %c0_16] : memref<8x128xf32, #tpu.memory_space<vmem>>, vector<8x128xf32>
      tpu.vector_store %arg8[%c0_15, %c0_16], %23 {strides = array<i32>} : memref<8x128xf32, #tpu.memory_space<vmem>>, vector<8x128xf32>,
    } else {
    }
    %c0 = arith.constant 0 : index
    %c0_1 = arith.constant 0 : index
    %3 = vector.load %arg4[%c0, %c0_1] : memref<32x128xi8, #tpu.memory_space<vmem>>, vector<32x128xi8>
    %4 = arith.sitofp %3 : vector<32x128xi8> to vector<32x128xf32>
    %c0_2 = arith.constant 0 : index
    %c0_3 = arith.constant 0 : index
    %5 = vector.load %arg2[%c0_2, %c0_3] : memref<32x128xbf16, #tpu.memory_space<vmem>>, vector<32x128xbf16>
    %6 = arith.extf %5 : vector<32x128xbf16> to vector<32x128xf32>
    %c0_4 = arith.constant 0 : index
    %c0_5 = arith.constant 0 : index
    %7 = vector.load %arg3[%c0_4, %c0_5] : memref<32x128xbf16, #tpu.memory_space<vmem>>, vector<32x128xbf16>
    %8 = arith.extf %7 : vector<32x128xbf16> to vector<32x128xf32>
    %9 = arith.subf %6, %8 : vector<32x128xf32>
    %10 = arith.mulf %9, %9 : vector<32x128xf32>
    %11 = arith.mulf %4, %10 : vector<32x128xf32>
    %c0_i32_6 = arith.constant 0 : i32
    %12 = arith.cmpi ne, %arg1, %c0_i32_6 : i32
    %13 = arith.extui %12 : i1 to i32
    %c0_i32_7 = arith.constant 0 : i32
    %14 = arith.cmpi ne, %13, %c0_i32_7 : i32
    scf.if %14 {
      %c0_12 = arith.constant 0 : index
      %c0_13 = arith.constant 0 : index
      %21 = vector.load %arg7[%c0_12, %c0_13] : memref<8x128xf32, #tpu.memory_space<vmem>>, vector<8x128xf32>
      %22 = vector.shape_cast %11 : vector<32x128xf32> to vector<4x8x128xf32>
      %cst = arith.constant dense<0.000000e+00> : vector<8x128xf32>
      %23 = vector.multi_reduction <add>, %22, %cst [0] : vector<4x8x128xf32> to vector<8x128xf32>
      %24 = arith.addf %21, %23 : vector<8x128xf32>
      %c0_14 = arith.constant 0 : index
      %c0_15 = arith.constant 0 : index
      %25 = vector.load %arg7[%c0_14, %c0_15] : memref<8x128xf32, #tpu.memory_space<vmem>>, vector<8x128xf32>
      tpu.vector_store %arg7[%c0_14, %c0_15], %24 {strides = array<i32>} : memref<8x128xf32, #tpu.memory_space<vmem>>, vector<8x128xf32>,
      %c0_16 = arith.constant 0 : index
      %c0_17 = arith.constant 0 : index
      %26 = vector.load %arg8[%c0_16, %c0_17] : memref<8x128xf32, #tpu.memory_space<vmem>>, vector<8x128xf32>
      %27 = vector.shape_cast %4 : vector<32x128xf32> to vector<4x8x128xf32>
      %cst_18 = arith.constant dense<0.000000e+00> : vector<8x128xf32>
      %28 = vector.multi_reduction <add>, %27, %cst_18 [0] : vector<4x8x128xf32> to vector<8x128xf32>
      %29 = arith.addf %26, %28 : vector<8x128xf32>
      %c0_19 = arith.constant 0 : index
      %c0_20 = arith.constant 0 : index
      %30 = vector.load %arg8[%c0_19, %c0_20] : memref<8x128xf32, #tpu.memory_space<vmem>>, vector<8x128xf32>
      tpu.vector_store %arg8[%c0_19, %c0_20], %29 {strides = array<i32>} : memref<8x128xf32, #tpu.memory_space<vmem>>, vector<8x128xf32>,
    } else {
    }
    %c0_i32_8 = arith.constant 0 : i32
    %15 = arith.cmpi eq, %arg1, %c0_i32_8 : i32
    %16 = arith.extui %15 : i1 to i32
    %c0_i32_9 = arith.constant 0 : i32
    %17 = arith.cmpi ne, %16, %c0_i32_9 : i32
    scf.if %17 {
      %c32_i32 = arith.constant 32 : i32
      %21 = arith.muli %arg1, %c32_i32 : i32
      %22 = tpu.iota {dimensions = array<i32: 0>} : vector<32x128xi32>
      %23 = vector.broadcast %21 : i32 to vector<32x128xi32>
      %24 = arith.addi %23, %22 : vector<32x128xi32>
      %c4_i32 = arith.constant 4 : i32
      %25 = vector.broadcast %c4_i32 : i32 to vector<32x128xi32>
      %26 = arith.cmpi slt, %24, %25 : vector<32x128xi32>
      %cst = arith.constant 0.000000e+00 : f32
      %27 = vector.broadcast %cst : f32 to vector<32x128xf32>
      %28 = arith.select %26, %4, %27 : vector<32x128xi1>, vector<32x128xf32>
      %cst_12 = arith.constant 0.000000e+00 : f32
      %29 = vector.broadcast %cst_12 : f32 to vector<32x128xf32>
      %30 = arith.select %26, %11, %29 : vector<32x128xi1>, vector<32x128xf32>
      %c0_13 = arith.constant 0 : index
      %c0_14 = arith.constant 0 : index
      %31 = vector.load %arg7[%c0_13, %c0_14] : memref<8x128xf32, #tpu.memory_space<vmem>>, vector<8x128xf32>
      %32 = vector.shape_cast %30 : vector<32x128xf32> to vector<4x8x128xf32>
      %cst_15 = arith.constant dense<0.000000e+00> : vector<8x128xf32>
      %33 = vector.multi_reduction <add>, %32, %cst_15 [0] : vector<4x8x128xf32> to vector<8x128xf32>
      %34 = arith.addf %31, %33 : vector<8x128xf32>
      %c0_16 = arith.constant 0 : index
      %c0_17 = arith.constant 0 : index
      %35 = vector.load %arg7[%c0_16, %c0_17] : memref<8x128xf32, #tpu.memory_space<vmem>>, vector<8x128xf32>
      tpu.vector_store %arg7[%c0_16, %c0_17], %34 {strides = array<i32>} : memref<8x128xf32, #tpu.memory_space<vmem>>, vector<8x128xf32>,
      %c0_18 = arith.constant 0 : index
      %c0_19 = arith.constant 0 : index
      %36 = vector.load %arg8[%c0_18, %c0_19] : memref<8x128xf32, #tpu.memory_space<vmem>>, vector<8x128xf32>
      %37 = vector.shape_cast %28 : vector<32x128xf32> to vector<4x8x128xf32>
      %cst_20 = arith.constant dense<0.000000e+00> : vector<8x128xf32>
      %38 = vector.multi_reduction <add>, %37, %cst_20 [0] : vector<4x8x128xf32> to vector<8x128xf32>
      %39 = arith.addf %36, %38 : vector<8x128xf32>
      %c0_21 = arith.constant 0 : index
      %c0_22 = arith.constant 0 : index
      %40 = vector.load %arg8[%c0_21, %c0_22] : memref<8x128xf32, #tpu.memory_space<vmem>>, vector<8x128xf32>
      tpu.vector_store %arg8[%c0_21, %c0_22], %39 {strides = array<i32>} : memref<8x128xf32, #tpu.memory_space<vmem>>, vector<8x128xf32>,
    } else {
    }
    %c0_i32_10 = arith.constant 0 : i32
    %18 = arith.cmpi eq, %arg1, %c0_i32_10 : i32
    %19 = arith.extui %18 : i1 to i32
    %c0_i32_11 = arith.constant 0 : i32
    %20 = arith.cmpi ne, %19, %c0_i32_11 : i32
    scf.if %20 {
      %c0_12 = arith.constant 0 : index
      %c0_13 = arith.constant 0 : index
      %21 = vector.load %arg7[%c0_12, %c0_13] : memref<8x128xf32, #tpu.memory_space<vmem>>, vector<8x128xf32>
      %cst = arith.constant dense<0.000000e+00> : vector<128xf32>
      %22 = vector.multi_reduction <add>, %21, %cst [0] : vector<8x128xf32> to vector<128xf32>
      %23 = vector.shape_cast %22 : vector<128xf32> to vector<1x128xf32>
      %c0_14 = arith.constant 0 : index
      %c0_15 = arith.constant 0 : index
      %24 = vector.load %arg5[%c0_14, %c0_15] : memref<1x128xf32, #tpu.memory_space<vmem>>, vector<1x128xf32>
      tpu.vector_store %arg5[%c0_14, %c0_15], %23 {strides = array<i32>} : memref<1x128xf32, #tpu.memory_space<vmem>>, vector<1x128xf32>,
      %c0_16 = arith.constant 0 : index
      %c0_17 = arith.constant 0 : index
      %25 = vector.load %arg8[%c0_16, %c0_17] : memref<8x128xf32, #tpu.memory_space<vmem>>, vector<8x128xf32>
      %cst_18 = arith.constant dense<0.000000e+00> : vector<128xf32>
      %26 = vector.multi_reduction <add>, %25, %cst_18 [0] : vector<8x128xf32> to vector<128xf32>
      %27 = vector.shape_cast %26 : vector<128xf32> to vector<1x128xf32>
      %c0_19 = arith.constant 0 : index
      %c0_20 = arith.constant 0 : index
      %28 = vector.load %arg6[%c0_19, %c0_20] : memref<1x128xf32, #tpu.memory_space<vmem>>, vector<1x128xf32>
      tpu.vector_store %arg6[%c0_19, %c0_20], %27 {strides = array<i32>} : memref<1x128xf32, #tpu.memory_space<vmem>>, vector<1x128xf32>,
    } else {
    }
    return
  }
  func.func @transform_0(%arg0: i32, %arg1: i32) -> (i32, i32) {
    %c0_i32 = arith.constant 0 : i32
    return %arg1, %arg0 : i32, i32
  }
  func.func @transform_1(%arg0: i32, %arg1: i32) -> (i32, i32) {
    %c0_i32 = arith.constant 0 : i32
    return %arg1, %arg0 : i32, i32
  }
  func.func @transform_2(%arg0: i32, %arg1: i32) -> (i32, i32) {
    %c0_i32 = arith.constant 0 : i32
    return %arg1, %arg0 : i32, i32
  }
  func.func @transform_3(%arg0: i32, %arg1: i32) -> (i32, i32) {
    %c0_i32 = arith.constant 0 : i32
    %c0_i32_0 = arith.constant 0 : i32
    return %c0_i32, %arg0 : i32, i32
  }
  func.func @transform_4(%arg0: i32, %arg1: i32) -> (i32, i32) {
    %c0_i32 = arith.constant 0 : i32
    %c0_i32_0 = arith.constant 0 : i32
    return %c0_i32, %arg0 : i32, i32
  }
}

</mosaic_0001>

<bundles_post_ra>
// kernel: tpu_custom_call.1
= control target key start
LH: loop header
LB: loop body
LE: loop exit
PB: predicated region body
PF: predicated region fallthrough
CT: control target
= control target key end

     0   :  { %10 = vsyncpa [#allocation5], 0  ;;  %s439_s0 = inlined_call_operand.hbm [shape: bf16[4,128], index: 0, kind: input, shape index: {}]   ;;  %s440_s1 = inlined_call_operand.hbm [shape: bf16[4,128], index: 1, kind: input, shape index: {}]   ;;  %s441_s2 = inlined_call_operand.vmem [shape: s8[4,128], index: 2, kind: input, shape index: {}]   ;;  %s442_s3 = inlined_call_operand.hbm [shape: f32[1,128], index: 3, kind: output, shape index: {0}]   ;;  %s443_s4 = inlined_call_operand.hbm [shape: f32[1,128], index: 4, kind: output, shape index: {1}]  }
   0x1   :  { %11 = vsyncpa [#allocation8], 0 }
   0x2   :  { %12 = vsyncpa [#allocation6], 0 }
   0x3   :  { %13 = vsyncpa [#allocation11], 0 }
   0x4   :  { %18 = vsyncadd [#allocation5], 224  ;;  %s390_s15 = smov [#allocation4]  }
   0x5   :  { %s19_s16 = sshll.u32 %s390_s15, 4  ;;  %s20_s16 = int_to_ptr.vmem [resolvable:$true] %s19_s16 }
   0x6   :  { %s310_s17 = scalar_lea.vmem %s20_s16, 32  ;;  %s314_s18 = scalar_lea.vmem %s20_s16, 256 }
   0x7   :  { %p311_p0 = scmp.ne.s32.totalorder %s20_s16, %s310_s17  ;;  %p315_p1 = scmp.lt.s32.totalorder %s20_s16, %s20_s16 }
   0x8   :  { %p316_p2 = scmp.lt.s32.totalorder %s314_s18, %s310_s17 }
   0xa   :  { %p317_p3 = por %p316_p2, %p315_p1 }
   0xc   :  { %p318_p4 = pnand %p317_p3, %p311_p0 }
   0xe   :  { %321 = shalt.err (!%p318_p4)
}
   0xf   :  { %s391_s19 = smov 32   ;;  %s392_s20 = smov 2  }
  0x10   :  { %25 = dma.hbm_to_vmem [thread:$0]  %s439_s0, 32, %s20_s16, [#allocation5], %s391_s19, %s391_s19, %s392_s20  }
  0x11   :  { %30 = vsyncadd [#allocation8], 224  ;;  %s393_s23 = smov [#allocation7]  }
  0x12   :  { %s31_s24 = sshll.u32 %s393_s23, 4  ;;  %s32_s24 = int_to_ptr.vmem [resolvable:$true] %s31_s24 }
  0x13   :  { %s330_s25 = scalar_lea.vmem %s32_s24, 32  ;;  %s334_s26 = scalar_lea.vmem %s32_s24, 256 }
  0x14   :  { %p331_p5 = scmp.ne.s32.totalorder %s32_s24, %s330_s25  ;;  %p335_p6 = scmp.lt.s32.totalorder %s32_s24, %s32_s24 }
  0x15   :  { %p336_p7 = scmp.lt.s32.totalorder %s334_s26, %s330_s25 }
  0x17   :  { %p337_p8 = por %p336_p7, %p335_p6 }
  0x19   :  { %p338_p9 = pnand %p337_p8, %p331_p5 }
  0x1b   :  { %341 = shalt.err (!%p338_p9)
}
  0x1c   :  { %37 = dma.hbm_to_vmem [thread:$0]  %s440_s1, 32, %s32_s24, [#allocation8], %s391_s19, %s391_s19, %s392_s20  }
  0x1d   :  { %382 = dma.done.wait [#allocation5], 256  }
  0x1e   :  { %383 = vsyncadd [#allocation5], 4294967040 }
  0x1f   :  { %384 = dma.done.wait [#allocation8], 256  }
  0x20   :  { %385 = vsyncadd [#allocation8], 4294967040  ;;  %v184_v0 = vlaneseq  ;;  %v52_v2 = vld [vmem:[%s441_s2] sm:$0x1]  ;;  %v53_v3 = vld [vmem:[%s441_s2 + $0x1] sm:$0x1] }
  0x21   :  { %v76_v4 = vld [vmem:[#allocation4] sm:$0x3]  ;;  %v60_v5 = vunpack.c.0.s8 %v52_v2  ;;  %v61_v6 = vunpack.c.0.s8 %v53_v3  ;;  %v77_v7 = vld [vmem:[#allocation4 + $0x2] sm:$0x3]  ;;  %v92_v9 = vld [vmem:[#allocation7] sm:$0x3] }
  0x22   :  { %v185_v1 = vshrl.u32 %v184_v0, 7  ;;  %v84_v8 = vunpack.c.l.bf16 %v76_v4  ;;  %v93_v10 = vld [vmem:[#allocation7 + $0x2] sm:$0x3]  ;;  %v85_v11 = vunpack.c.l.bf16 %v77_v7  ;;  %v100_v12 = vunpack.c.l.bf16 %v92_v9  ;;  %s394_s1 = smov [#allocation10]   ;;  %s395_s6 = smov [#allocation9]  }
  0x23   :  { %v101_v13 = vunpack.c.l.bf16 %v93_v10  ;;  %v68_v14 = vcvt.s32.f32 %v60_v5  ;;  %v69_v15 = vcvt.s32.f32 %v61_v6  ;;  %s282_s2 = sshll.u32 %s394_s1, 4  ;;  %s272_s7 = sshll.u32 %s395_s6, 4  ;;  %s283_s2 = int_to_ptr.vmem [resolvable:$true] %s282_s2  ;;  %s273_s7 = int_to_ptr.vmem [resolvable:$true] %s272_s7 }
  0x24   :  { %v108_v16 = vsub.f32 %v84_v8, %v100_v12  ;;  %vm194_vm0 = vcmp.lt.s32.totalorder %v185_v1, 4  ;;  %s342_s8 = scalar_lea.vmem %s283_s2, 16  ;;  %s346_s9 = scalar_lea.vmem %s283_s2, 32 }
  0x25   :  { %v109_v17 = vsub.f32 %v85_v11, %v101_v13  ;;  %v206_v18 = vcombine.low %v68_v14, %v69_v15  ;;  %p343_p10 = scmp.ne.s32.totalorder %s283_s2, %s342_s8  ;;  %p347_p11 = scmp.lt.s32.totalorder %s283_s2, %s283_s2 }
  0x26   :  { %v116_v19 = vmul.f32 %v108_v16, %v108_v16  ;;  %p348_p12 = scmp.lt.s32.totalorder %s346_s9, %s342_s8 }
  0x27   :  { %v117_v20 = vmul.f32 %v109_v17, %v109_v17  ;;  %v214_v21 = vsel %vm194_vm0, %v206_v18, 0.0 }
  0x28   :  { %v124_v22 = vmul.f32 %v116_v19, %v68_v14  ;;  %v259_v24 = vrot.slane %v214_v21, 4  ;;  %p349_p13 = por %p348_p12, %p347_p11 }
  0x29   :  { %v125_v23 = vmul.f32 %v117_v20, %v69_v15 }
  0x2a   :  { %v260_v26 = vadd.f32 %v259_v24, %v214_v21  ;;  %p350_p0 = pnand %p349_p13, %p343_p10 }
  0x2b   :  { %v226_v25 = vcombine.low %v124_v22, %v125_v23 }
  0x2c   :  { %v261_v28 = vrot.slane %v260_v26, 2 }
  0x2d   :  { %v234_v27 = vsel %vm194_vm0, %v226_v25, 0.0 }
  0x2e   :  { %v251_v29 = vrot.slane %v234_v27, 4  ;;  %v262_v30 = vadd.f32 %v261_v28, %v260_v26 }
  0x30   :  { %v252_v31 = vadd.f32 %v251_v29, %v234_v27  ;;  %v263_v32 = vrot.slane %v262_v30, 1 }
  0x32   :  { %v253_v33 = vrot.slane %v252_v31, 2  ;;  %v264_v34 = vadd.f32 %v263_v32, %v262_v30 }
  0x34   :  { %v254_v35 = vadd.f32 %v253_v33, %v252_v31  ;;  %265 = vst [vmem:[#allocation10] sm:$0x1] %v264_v34 }
  0x36   :  { %v255_v36 = vrot.slane %v254_v35, 1 }
  0x37   :  { %353 = shalt.err (!%p350_p0)
}
  0x38   :  { %285 = dma.vmem_to_hbm [thread:$0]  %s283_s2, 16, %s443_s4, [#allocation11]   ;;  %v256_v37 = vadd.f32 %v255_v36, %v254_v35 }
  0x39   :  { %s362_s12 = scalar_lea.vmem %s273_s7, 16  ;;  %s366_s13 = scalar_lea.vmem %s273_s7, 32 }
  0x3a   :  { %257 = vst [vmem:[#allocation9] sm:$0x1] %v256_v37  ;;  %p363_p1 = scmp.ne.s32.totalorder %s273_s7, %s362_s12  ;;  %p367_p2 = scmp.lt.s32.totalorder %s273_s7, %s273_s7 }
  0x3b   :  { %p368_p3 = scmp.lt.s32.totalorder %s366_s13, %s362_s12 }
  0x3d   :  { %p369_p4 = por %p368_p3, %p367_p2 }
  0x3f   :  { %p370_p5 = pnand %p369_p4, %p363_p1 }
  0x41   :  { %373 = shalt.err (!%p370_p5)
}
  0x42   :  { %275 = dma.vmem_to_hbm [thread:$0]  %s273_s7, 16, %s442_s3, [#allocation6]  }
  0x43   :  { %386 = dma.done.wait [#allocation6], 16  }
  0x44   :  { %387 = vsyncadd [#allocation6], 4294967280 }
  0x45   :  { %388 = dma.done.wait [#allocation11], 16  }
  0x46   :  { %389 = vsyncadd [#allocation11], 4294967280 }
  0x47   :  { %292 = vsyncpa [#allocation5], 1 }
  0x48   :  { %293 = vsyncpa [#allocation8], 1 }
  0x49   :  { %294 = vsyncpa [#allocation6], 1 }
  0x4a   :  { %295 = vsyncpa [#allocation11], 1 }

</bundles_post_ra>
